<compile_context>
chip_gen: v5e
topology: v5e:2x2
jax: 0.10.0
libtpu: 0.0.40
codegen_flags: <defaults>
</compile_context>

<pallas_src>
import jax
import jax.numpy as jnp
from jax.experimental import pallas as pl
from jax.experimental.pallas import tpu as pltpu

LEAKY_SLOPE = 0.2

# VMEM budget (bytes) for the double-buffered streamed blocks (input + output).
_BLOCK_VMEM_BUDGET = 32 * 1024 * 1024
_MAX_BATCH_BLOCK = 16  # cap on the statically-unrolled per-block batch loop


def _round_up(x, m):
    return ((x + m - 1) // m) * m


def _cdiv(a, b):
    return -(-a // b)


def _conv1x1_lrelu_kernel(x_ref, w_ref, b_ref, o_ref):
    """1x1 conv + LeakyReLU on a (nb, Cin, TILE) activation block.

    x_ref: (nb, Cin, TILE)  -- Cin on sublanes, spatial on lanes (lane-dense)
    w_ref: (Cout, Cin)      -- tiny, resident across the grid
    b_ref: (Cout, 1)        -- broadcast along lanes
    o_ref: (nb, Cout, TILE) -- lane-dense output, unmasked stores

    Ragged last blocks are safe: each output column depends only on its own
    input column, and padded columns / batch rows are never written back.
    Do NOT add any cross-column reduction here without revisiting that.
    """
    w = w_ref[...]
    b = b_ref[...]
    nb = x_ref.shape[0]
    for i in range(nb):  # static unroll; nb is small (<= _MAX_BATCH_BLOCK)
        y = jnp.dot(w, x_ref[i], preferred_element_type=jnp.float32)
        y = y + b
        o_ref[i] = jnp.maximum(y, LEAKY_SLOPE * y).astype(o_ref.dtype)


def _plan_blocks(n, hw, cin, cout, itemsize):
    """Pick (nb, tile_m).

    - tile_m big enough that double-buffered (Cin+Cout) blocks fill the VMEM
      budget (amortizes per-grid-step overhead on v5e/v6e/v7x alike).
    - fold batches (nb > 1) when one tile already covers H*W and N is large.
    - keep >= 2 total grid blocks when possible (v7x has 2 TensorCores sharded
      across the 'parallel' grid axes).
    """
    hw128 = _round_up(hw, 128)
    per_lane = 2 * (cin + cout) * itemsize  # double-buffered, nb == 1
    budget_tile = max(128, (_BLOCK_VMEM_BUDGET // per_lane) // 128 * 128)
    tile_m = min(hw128, budget_tile)

    nb = 1
    if tile_m >= hw128 and n >= 4:
        # Small-spatial / many-batch regime: several images per block.
        budget_nb = max(1, _BLOCK_VMEM_BUDGET // (2 * (cin + cout) * itemsize * tile_m))
        nb = int(max(1, min(n // 2, budget_nb, _MAX_BATCH_BLOCK)))

    # Megacore guard: make sure the grid has at least 2 blocks when we can.
    if _cdiv(n, nb) * _cdiv(hw, tile_m) < 2 and hw > 128:
        tile_m = _round_up(_cdiv(hw, 2), 128)

    return nb, tile_m


@jax.jit
def aggregator_forward(x, weight, bias):
    """Aggregator(aggr='net', norm='none') forward.

    x: (N, C, D, H, W); weight: (Cout, C*D) or (Cout, C*D, 1, 1); bias: (Cout,)
    Returns (N, Cout, H, W) in x.dtype.
    """
    N, C, D, H, W = x.shape
    Cin = C * D
    weight2d = weight.reshape(weight.shape[0], -1)  # accept Conv2d (Cout,Cin,1,1)
    Cout = weight2d.shape[0]
    HW = H * W
    itemsize = jnp.dtype(x.dtype).itemsize

    nb, tile_m = _plan_blocks(N, HW, Cin, Cout, itemsize)

    # view(N, C*D, H, W) then merge spatial: NCHW already has spatial last,
    # so this is a pure reshape -- no transpose, no pad, no extra HBM passes.
    x_flat = x.reshape(N, Cin, HW)
    w = weight2d.astype(x.dtype)                 # stream in compute dtype
    b2 = bias.reshape(Cout, 1).astype(jnp.float32)

    grid = (pl.cdiv(N, nb), pl.cdiv(HW, tile_m))

    # Scoped-VMEM limit derived from the actual double-buffered block footprint
    # (safe under v7x's 64 MiB physical VMEM, above v5e's 16 MiB default).
    block_bytes = nb * (Cin + Cout) * tile_m * itemsize
    vmem_limit = int(min(48 * 2**20, max(16 * 2**20, 2 * block_bytes + 4 * 2**20)))

    cost = pl.CostEstimate(
        flops=int(2 * N * HW * Cin * Cout),
        transcendentals=0,
        bytes_accessed=int(itemsize * N * HW * (Cin + Cout)
                           + itemsize * Cout * Cin + 4 * Cout),
    )

    out_flat = pl.pallas_call(
        _conv1x1_lrelu_kernel,
        out_shape=jax.ShapeDtypeStruct((N, Cout, HW), x.dtype),
        grid_spec=pltpu.PrefetchScalarGridSpec(
            num_scalar_prefetch=0,
            grid=grid,
            in_specs=[
                # Streamed activation block: (nb, Cin, tile_m) -- lane-dense.
                pl.BlockSpec((nb, Cin, tile_m), lambda n, j: (n, 0, j)),
                # Resident weight / bias (constant index maps, tiny tiles).
                pl.BlockSpec((Cout, Cin), lambda n, j: (0, 0)),
                pl.BlockSpec((Cout, 1), lambda n, j: (0, 0)),
            ],
            out_specs=pl.BlockSpec((nb, Cout, tile_m), lambda n, j: (n, 0, j)),
        ),
        compiler_params=pltpu.CompilerParams(
            dimension_semantics=("parallel", "parallel"),
            vmem_limit_bytes=vmem_limit,
        ),
        cost_estimate=cost,
    )(x_flat, w, b2)

    # Already NCHW layout: just unflatten spatial.
    return out_flat.reshape(N, Cout, H, W)


def reference_forward(x, weight, bias):
    N, C, D, H, W = x.shape
    Cin = C * D
    x2d = x.reshape(N, Cin, H, W).astype(jnp.float32)
    w2d = weight.reshape(weight.shape[0], -1).astype(jnp.float32)
    y = jnp.einsum("nchw,oc->nohw", x2d, w2d) + bias[None, :, None, None]
    return jnp.where(y > 0, y, LEAKY_SLOPE * y)


if __name__ == "__main__":
    key = jax.random.PRNGKey(0)
    kx, kw, kb, kx2 = jax.random.split(key, 4)

    # Main test: (N, C, D, H, W); inp_dim = C*D.
    N, C, D, H, W = 2, 4, 2, 16, 16
    inp_dim, out_dim = C * D, 16

    x = jax.random.normal(kx, (N, C, D, H, W), dtype=jnp.float32)
    weight = jax.random.normal(kw, (out_dim, inp_dim), dtype=jnp.float32) * 0.1
    bias = jax.random.normal(kb, (out_dim,), dtype=jnp.float32) * 0.1

    out = jax.block_until_ready(aggregator_forward(x, weight, bias))
    ref = reference_forward(x, weight, bias)
    assert out.shape == (N, out_dim, H, W)
    assert jnp.allclose(out, ref, atol=1e-4, rtol=1e-4)

    # Secondary test: ragged spatial size (H*W not a multiple of 128) and N=1
    # (exercises the partial-last-block path and the >=2-block megacore guard).
    N2, C2, D2, H2, W2 = 1, 2, 4, 15, 9
    x2 = jax.random.normal(kx2, (N2, C2, D2, H2, W2), dtype=jnp.float32)
    out2 = jax.block_until_ready(aggregator_forward(x2, weight, bias))
    ref2 = reference_forward(x2, weight, bias)
    assert out2.shape == (N2, out_dim, H2, W2)
    assert jnp.allclose(out2, ref2, atol=1e-4, rtol=1e-4)

    print("KERNEL_OK")
</pallas_src>

<mosaic_0001>
module attributes {stable_mosaic.version = 11 : i64} {
  func.func @_conv1x1_lrelu_kernel(%arg0: i32, %arg1: i32, %arg2: memref<1x8x256xf32, #tpu.memory_space<vmem>>, %arg3: memref<16x8xf32, #tpu.memory_space<vmem>>, %arg4: memref<16x1xf32, #tpu.memory_space<vmem>>, %arg5: memref<1x16x256xf32, #tpu.memory_space<vmem>>) attributes {dimension_semantics = [#tpu.dimension_semantics<parallel>, #tpu.dimension_semantics<parallel>], iteration_bounds = array<i64: 2, 1>, scalar_prefetch = 0 : i64, scratch_operands = 0 : i64, tpu.core_type = #tpu.core_type<tc>, window_params = [{transform_indices = @transform_0, window_bounds = array<i64: 1, 8, 256>}, {pipeline_mode = #tpu.pipeline_mode<synchronous>, transform_indices = @transform_1, window_bounds = array<i64: 16, 8>}, {pipeline_mode = #tpu.pipeline_mode<synchronous>, transform_indices = @transform_2, window_bounds = array<i64: 16, 1>}, {transform_indices = @transform_3, window_bounds = array<i64: 1, 16, 256>}]} {
    %c0 = arith.constant 0 : index
    %c0_0 = arith.constant 0 : index
    %0 = vector.load %arg3[%c0, %c0_0] : memref<16x8xf32, #tpu.memory_space<vmem>>, vector<16x8xf32>
    %c0_1 = arith.constant 0 : index
    %c0_2 = arith.constant 0 : index
    %1 = vector.load %arg4[%c0_1, %c0_2] : memref<16x1xf32, #tpu.memory_space<vmem>>, vector<16x1xf32>
    %c0_3 = arith.constant 0 : index
    %c0_4 = arith.constant 0 : index
    %c0_5 = arith.constant 0 : index
    %2 = vector.load %arg2[%c0_3, %c0_4, %c0_5] : memref<1x8x256xf32, #tpu.memory_space<vmem>>, vector<1x8x256xf32>
    %3 = vector.shape_cast %2 : vector<1x8x256xf32> to vector<8x256xf32>
    %cst = arith.constant dense<0.000000e+00> : vector<16x256xf32>
    %4 = tpu.matmul %0, %3, %cst {dimension_numbers = #tpu.dot_dimension_numbers<[1], [0], [0], [1], [0, 0, 1, 1], [], []>} : vector<16x8xf32>, vector<8x256xf32>, vector<16x256xf32> -> vector<16x256xf32>
    %5 = vector.broadcast %1 : vector<16x1xf32> to vector<16x256xf32>
    %6 = arith.addf %4, %5 : vector<16x256xf32>
    %cst_6 = arith.constant 2.000000e-01 : f32
    %7 = vector.broadcast %cst_6 : f32 to vector<16x256xf32>
    %8 = arith.mulf %7, %6 : vector<16x256xf32>
    %9 = arith.maximumf %6, %8 : vector<16x256xf32>
    %c0_7 = arith.constant 0 : index
    %c0_8 = arith.constant 0 : index
    %c0_9 = arith.constant 0 : index
    %10 = vector.load %arg5[%c0_7, %c0_8, %c0_9] : memref<1x16x256xf32, #tpu.memory_space<vmem>>, vector<1x16x256xf32>
    %11 = vector.shape_cast %10 : vector<1x16x256xf32> to vector<16x256xf32>
    %12 = vector.shape_cast %9 : vector<16x256xf32> to vector<1x16x256xf32>
    tpu.vector_store %arg5[%c0_7, %c0_8, %c0_9], %12 {strides = array<i32>} : memref<1x16x256xf32, #tpu.memory_space<vmem>>, vector<1x16x256xf32>,
    return
  }
  func.func @transform_0(%arg0: i32, %arg1: i32) -> (i32, i32, i32) {
    %c0_i32 = arith.constant 0 : i32
    %c0_i32_0 = arith.constant 0 : i32
    return %arg0, %c0_i32, %arg1 : i32, i32, i32
  }
  func.func @transform_1(%arg0: i32, %arg1: i32) -> (i32, i32) {
    %c0_i32 = arith.constant 0 : i32
    %c0_i32_0 = arith.constant 0 : i32
    %c0_i32_1 = arith.constant 0 : i32
    return %c0_i32, %c0_i32_0 : i32, i32
  }
  func.func @transform_2(%arg0: i32, %arg1: i32) -> (i32, i32) {
    %c0_i32 = arith.constant 0 : i32
    %c0_i32_0 = arith.constant 0 : i32
    %c0_i32_1 = arith.constant 0 : i32
    return %c0_i32, %c0_i32_0 : i32, i32
  }
  func.func @transform_3(%arg0: i32, %arg1: i32) -> (i32, i32, i32) {
    %c0_i32 = arith.constant 0 : i32
    %c0_i32_0 = arith.constant 0 : i32
    return %arg0, %c0_i32, %arg1 : i32, i32, i32
  }
}

</mosaic_0001>

<bundles_post_ra>
// kernel: aggregator_forward.1
= control target key start
LH: loop header
LB: loop body
LE: loop exit
PB: predicated region body
PF: predicated region fallthrough
CT: control target
= control target key end

     0   :  { %s468_s12 = smov 0   ;;  %s470_s13 = smov 0   ;;  %s513_s0 = inlined_call_operand.vmem [shape: f32[2,8,256], index: 0, kind: input, shape index: {}]   ;;  %s514_s1 = inlined_call_operand.vmem [shape: f32[16,8], index: 1, kind: input, shape index: {}]   ;;  %s515_s2 = inlined_call_operand.vmem [shape: f32[16,1], index: 2, kind: input, shape index: {}]   ;;  %s516_s3 = inlined_call_operand.vmem [shape: f32[2,16,256], index: 3, kind: output, shape index: {}]  }
   0x1   :  { %s472_s14 = smov 0  }
   0x2 LB: > { %s25_s15 = sadd.s32 1, %s441_s13  ;;  %p382_p0 = scmp.ge.s32.totalorder %s445_s14, 1  ;;  %s445_s14 = sphi %s472_s14, %s13_s14   ;;  %s441_s13 = sphi %s470_s13, %s518_s13   ;;  %s437_s12 = sphi %s468_s12, %s517_s12  }
   0x3   : > { %p27_p1 = scmp.ge.s32.totalorder %s25_s15, 2  ;;  %p158_p2 = scmp.lt.s32.totalorder %s445_s14, 3 }
   0x5   : > { %s520_s15 = smov (%p27_p1, %s25_s15), 0  ;;  %p159_p3 = pnand %p382_p0, %p158_p2 }
   0x6   : > { %p191_p4 = scmp.lt.s32.totalorder (!%p159_p3), %s437_s12, 1 }
   0x7   : > { %162 = sbr.rel (%p159_p3) target bundleno = 158 (0x9e), region = 32 }
   0xc   : > { %v212_v0 = vld [vmem:[%s515_s2] sm:$0xff]  ;;  %v447_v1 = vmov 0   ;;  %s522_s12 = smov (!%p191_p4, %s437_s12), 1  ;;  %vm226_vm0 = vcmask 64512   ;;  %v211_v5 = vld [vmem:[%s514_s1 + $0x8] sm:$0xff] }
   0xd   : > { %422 = vset.pattern.permute.xlu0 %v447_v1  ;;  %s393_s18 = sshll.u32 %s522_s12, 4  ;;  %v210_v2 = vld [vmem:[%s514_s1] sm:$0xff]  ;;  %v213_v6 = vld [vmem:[%s515_s2 + $0x8] sm:$0xff]  ;;  %s394_s28 = sshll.u32 %s522_s12, 5 }
   0xe   : > { %218 = vperm.xlu0 %422, %v212_v0   ;;  %s198_s21 = scalar_lea.vmem %s513_s0, %s393_s18  ;;  %s208_s4 = scalar_lea.vmem %s516_s3, %s394_s28 }
   0xf   : > { %v214_v3 = vld [vmem:[%s198_s21] sm:$0xff]  ;;  %v215_v4 = vld [vmem:[%s198_s21 + $0x8] sm:$0xff] }
  0x10   : > { %248 = vmatpush.msra.mxu0 %v214_v3  ;;  %395 = vmatpush.msra.mxu2 %v214_v3 }
  0x11   : > { %271 = vmatpush.msra.mxu1 %v215_v4  ;;  %396 = vmatpush.msra.mxu3 %v215_v4 }
  0x12   : > { %387 = vmatmul.msk.f32.vlgmr.msra.gmra.mxu0 %vm226_vm0, %v210_v2  ;;  %388 = vmatmul.msk.f32.vlgmr.msra.gmra.mxu2 %vm226_vm0, %v211_v5 }
  0x13   : > { %389 = vmatmul.msk.f32.vlgmr.msra.gmra.mxu1 %vm226_vm0, %v210_v2  ;;  %390 = vmatmul.msk.f32.vlgmr.msra.gmra.mxu3 %vm226_vm0, %v211_v5 }
  0x16   : > { %223 = vperm.xlu0 %422, %v213_v6  }
  0x80   : > { %v219_v7 = vpop.permute.xlu0 %218 }
  0x88   : > { %v224_v15 = vpop.permute.xlu0 %223 }
  0x8f   : > { %v250_v8 = vpop.f32.mrf.mxu0 }
  0x90   : > { %v251_v9 = vadd.f32 %v250_v8, %v219_v7  ;;  %v273_v10 = vpop.f32.mrf.mxu1 }
  0x91   : > { %v274_v11 = vadd.f32 %v273_v10, %v219_v7 }
  0x92   : > { %v279_v12 = vmul.f32 0.2, %v251_v9 }
  0x93   : > { %v280_v13 = vmul.f32 0.2, %v274_v11 }
  0x94   : > { %v283_v14 = vmax.f32 %v251_v9, %v279_v12 }
  0x95   : > { %v284_v16 = vmax.f32 %v274_v11, %v280_v13  ;;  %v253_v17 = vpop.f32.mrf.mxu2 }
  0x96   : > { %287 = vst [vmem:[%s208_s4] sm:$0xff] %v283_v14  ;;  %v254_v18 = vadd.f32 %v253_v17, %v224_v15  ;;  %v276_v19 = vpop.f32.mrf.mxu3 }
  0x97   : > { %288 = vst [vmem:[%s208_s4 + $0x8] sm:$0xff] %v284_v16  ;;  %v277_v20 = vadd.f32 %v276_v19, %v224_v15 }
  0x98   : > { %v281_v21 = vmul.f32 0.2, %v254_v18 }
  0x99   : > { %v282_v22 = vmul.f32 0.2, %v277_v20 }
  0x9a   : > { %v285_v23 = vmax.f32 %v254_v18, %v281_v21 }
  0x9b   : > { %v286_v24 = vmax.f32 %v277_v20, %v282_v22 }
  0x9c   : > { %289 = vst [vmem:[%s208_s4 + $0x10] sm:$0xff] %v285_v23 }
  0x9d   : > { %290 = vst [vmem:[%s208_s4 + $0x18] sm:$0xff] %v286_v24 }
  0x9e PF: > { %s13_s14 = sadd.s32 1, %s445_s14   ;;  %s517_s12 = smov %s441_s13 }
  0x9f   : > { %p10_p5 = scmp.ge.s32.totalorder %s13_s14, 4   ;;  %s518_s13 = smov %s520_s15 }
  0xa1   :  { %12 = sbr.rel (!%p10_p5) target bundleno = 2 (0x2), region = 62 }

</bundles_post_ra>
